<compile_context>
chip_gen: v6e
topology: v6e:2x2x1
jax: 0.10.0
libtpu: 0.0.40
codegen_flags: <defaults>
</compile_context>

<pallas_src>
import functools

import jax
import jax.numpy as jnp
from jax.experimental import pallas as pl
from jax.experimental.pallas import tpu as pltpu


# ----------------------------------------------------------------------------
# small helpers
# ----------------------------------------------------------------------------
def _round_up(x, m):
    return (x + m - 1) // m * m


def _pick_tile(m, block_rows):
    # tile rows: multiple of 16 (bf16 sublane packing), clipped to the problem.
    tm = min(_round_up(block_rows, 16), _round_up(m, 16))
    return max(tm, 16)


# ----------------------------------------------------------------------------
# Pallas kernels
# ----------------------------------------------------------------------------
def _enc_vq_kernel(p_ref, w_ref, b_ref, cb_ref, cbsq_ref, out_ref):
    """Fused encoder tile: conv-matmul + bias + ReLU + vector quantization.

    p_ref    : [TM, 9*Cin]   bf16  im2col patches tile
    w_ref    : [9*Cin, D]    bf16  encoder conv weight   (resident)
    b_ref    : [1, D]        f32   encoder conv bias     (resident)
    cb_ref   : [Kpad, D]     bf16  codebook, zero-padded (resident)
    cbsq_ref : [1, Kpad]     f32   ||e_k||^2, +LARGE on pad rows (resident)
    out_ref  : [TM, OW]      f32   packed lane-dense tile:
                 cols [0, D)   quantized code q
                 col  D        argmin index (as f32)
                 col  D+1      per-row sum((z - q)^2)  (VQ-cost partial)
                 cols [D+2,OW) zeros
    """
    d = cb_ref.shape[1]
    k_pad = cb_ref.shape[0]
    tm, out_w = out_ref.shape

    # conv as matmul: bf16 in, f32 accumulate (MXU), ReLU in f32 (VPU)
    z = jnp.dot(p_ref[...], w_ref[...], preferred_element_type=jnp.float32)
    z = jnp.maximum(z + b_ref[...], 0.0)                          # [TM, D] f32

    # distances for argmin: ||z||^2 is constant over k -> dropped.
    cross = jax.lax.dot_general(
        z.astype(jnp.bfloat16), cb_ref[...],
        dimension_numbers=(((1,), (1,)), ((), ())),
        preferred_element_type=jnp.float32)                       # [TM, Kpad]
    dist = cbsq_ref[...] - 2.0 * cross                            # [TM, Kpad]

    iota_k = jax.lax.broadcasted_iota(jnp.int32, dist.shape, 1)
    min_d = jnp.min(dist, axis=1, keepdims=True)                  # [TM, 1]
    idx = jnp.min(jnp.where(dist == min_d, iota_k, k_pad),
                  axis=1, keepdims=True)                          # [TM, 1] int32

    # gather nearest codebook rows via one-hot @ codebook (MXU, bf16 in)
    onehot = (iota_k == idx).astype(jnp.bfloat16)                 # [TM, Kpad]
    q = jnp.dot(onehot, cb_ref[...], preferred_element_type=jnp.float32)

    diff = z - q
    row_ssd = jnp.sum(diff * diff, axis=1, keepdims=True)         # [TM, 1]

    out_ref[:, 0:d] = q
    out_ref[:, d:d + 1] = idx.astype(jnp.float32)
    out_ref[:, d + 1:d + 2] = row_ssd
    out_ref[:, d + 2:] = jnp.zeros((tm, out_w - d - 2), jnp.float32)


def _dec_kernel(p_ref, w_ref, b_ref, o_ref):
    """Decoder tile: (phase patches) @ (phase weights) + bias, tanh.

    p_ref : [TM, 4*D]      bf16   2x2 sub-pixel patches of the code map
    w_ref : [4*D, Cpad]    bf16   phase-collapsed conv weights (resident)
    b_ref : [1, Cpad]      f32
    o_ref : [TM, Cpad]     f32    (Cpad = out channels zero-padded to 128)
    """
    acc = jnp.dot(p_ref[...], w_ref[...], preferred_element_type=jnp.float32)
    o_ref[...] = jnp.tanh(acc + b_ref[...])


# ----------------------------------------------------------------------------
# Encoder: im2col glue + fused matmul/ReLU/VQ pallas_call
# ----------------------------------------------------------------------------
def im2col(x, ksize, stride, pad):
    # x: [N, H, W, C] -> [N, Ho, Wo, ksize*ksize*C]
    n, h, w, c = x.shape
    xp = jnp.pad(x, ((0, 0), (pad, pad), (pad, pad), (0, 0)))
    ho = (h + 2 * pad - ksize) // stride + 1
    wo = (w + 2 * pad - ksize) // stride + 1
    cols = []
    for dy in range(ksize):
        for dx in range(ksize):
            cols.append(xp[:, dy:dy + stride * ho:stride,
                           dx:dx + stride * wo:stride, :])
    return jnp.concatenate(cols, axis=-1)


def encoder_vq(patches2d, enc_w, enc_b, codebook, *, beta, block_rows):
    m, kc = patches2d.shape
    d = enc_w.shape[1]
    k = codebook.shape[0]
    k_pad = _round_up(max(k, 128), 128)          # lane-dense codebook axis
    out_w = _round_up(max(d + 2, 128), 128)      # lane-dense packed output

    cb_b = codebook.astype(jnp.bfloat16)
    cb_sq = jnp.sum(cb_b.astype(jnp.float32) ** 2, axis=1)
    cb_pad = jnp.zeros((k_pad, d), jnp.bfloat16).at[:k].set(cb_b)
    cbsq_pad = jnp.full((1, k_pad), 1e30, jnp.float32).at[0, :k].set(cb_sq)

    tm = _pick_tile(m, block_rows)
    m_pad = _round_up(m, tm)
    p = jnp.zeros((m_pad, kc), jnp.bfloat16).at[:m].set(patches2d.astype(jnp.bfloat16))

    flops = 2 * m_pad * d * (kc + 2 * k_pad)
    bytes_accessed = (m_pad * kc * 2 + kc * d * 2 + k_pad * d * 2
                      + 4 * (d + k_pad) + m_pad * out_w * 4)

    packed = pl.pallas_call(
        _enc_vq_kernel,
        grid=(m_pad // tm,),
        in_specs=[
            pl.BlockSpec((tm, kc), lambda i: (i, 0)),
            pl.BlockSpec((kc, d), lambda i: (0, 0)),
            pl.BlockSpec((1, d), lambda i: (0, 0)),
            pl.BlockSpec((k_pad, d), lambda i: (0, 0)),
            pl.BlockSpec((1, k_pad), lambda i: (0, 0)),
        ],
        out_specs=pl.BlockSpec((tm, out_w), lambda i: (i, 0)),
        out_shape=jax.ShapeDtypeStruct((m_pad, out_w), jnp.float32),
        compiler_params=pltpu.CompilerParams(
            dimension_semantics=("parallel",)),
        cost_estimate=pl.CostEstimate(flops=flops, transcendentals=0,
                                      bytes_accessed=bytes_accessed),
    )(p, enc_w.astype(jnp.bfloat16),
      enc_b.reshape(1, d).astype(jnp.float32), cb_pad, cbsq_pad)

    code = packed[:m, :d]
    index = packed[:m, d].astype(jnp.int32)
    cost = (1.0 + beta) * jnp.sum(packed[:m, d + 1]) / jnp.float32(m * d)
    return code, index, cost


def encoder_forward(params, x_nhwc, *, beta, block_rows):
    n, h, w, c = x_nhwc.shape
    patches = im2col(x_nhwc, ksize=3, stride=2, pad=1)       # [N, H/2, W/2, 9C] bf16
    ho, wo = patches.shape[1], patches.shape[2]
    code_flat, idx_flat, cost = encoder_vq(
        patches.reshape(n * ho * wo, -1), params["enc_w"], params["enc_b"],
        params["codebook"], beta=beta, block_rows=block_rows)
    code = code_flat.reshape(n, ho, wo, -1)
    index = idx_flat.reshape(n, ho, wo)
    return code, index, cost


# ----------------------------------------------------------------------------
# Decoder: nearest-2x-upsample + 3x3 conv fused as 4 sub-pixel 2x2 convs
# ----------------------------------------------------------------------------
# For phase (a,b) (output pixel (2i+a, 2j+b)), the 3x3 taps on the upsampled
# map collapse onto a 2x2 window of the (zero-padded) code map starting at
# (i+a, j+b); tap dy maps to window row u with (a+dy-1)//2 == u-1+a.
_TAP_SETS = {0: ((0,), (1, 2)), 1: ((0, 1), (2,))}


def _phase_weights(w3, out_pad):
    # w3: [3, 3, C, Cout] -> [4, 4*C, out_pad]  (phase p = 2a + b)
    _, _, c, cout = w3.shape
    phases = []
    for a in (0, 1):
        for b in (0, 1):
            blocks = []
            for u in (0, 1):
                for v in (0, 1):
                    acc = jnp.zeros((c, cout), w3.dtype)
                    for dy in _TAP_SETS[a][u]:
                        for dx in _TAP_SETS[b][v]:
                            acc = acc + w3[dy, dx]
                    blocks.append(acc)
            phases.append(jnp.concatenate(blocks, axis=0))       # [4*C, Cout]
    w_eff = jnp.stack(phases, axis=0)                            # [4, 4*C, Cout]
    return jnp.pad(w_eff, ((0, 0), (0, 0), (0, out_pad - cout)))


def _phase_patches(code_nhwc):
    # code: [N, Hc, Wc, C] -> [4, N*Hc*Wc, 4*C]  (phase p = 2a + b)
    n, hc, wc, c = code_nhwc.shape
    cp = jnp.pad(code_nhwc, ((0, 0), (1, 1), (1, 1), (0, 0)))
    phases = []
    for a in (0, 1):
        for b in (0, 1):
            parts = [cp[:, a + u:a + u + hc, b + v:b + v + wc, :]
                     for u in (0, 1) for v in (0, 1)]
            phases.append(jnp.concatenate(parts, axis=-1).reshape(n * hc * wc, 4 * c))
    return jnp.stack(phases, axis=0)


def decoder_forward(params, code_nhwc, *, block_rows):
    n, hc, wc, c = code_nhwc.shape
    cout = params["dec_b"].shape[0]
    out_pad = _round_up(max(cout, 128), 128)     # lane-dense output channels
    kdim = 4 * c

    patches = _phase_patches(code_nhwc).astype(jnp.bfloat16)          # [4, M, 4C]
    w_eff = _phase_weights(params["dec_w"], out_pad).astype(jnp.bfloat16)
    b_pad = jnp.zeros((1, out_pad), jnp.float32).at[0, :cout].set(
        params["dec_b"].astype(jnp.float32))

    m = n * hc * wc
    tm = _pick_tile(m, block_rows)
    m_pad = _round_up(m, tm)
    if m_pad != m:
        patches = jnp.pad(patches, ((0, 0), (0, m_pad - m), (0, 0)))

    flops = 2 * 4 * m_pad * kdim * out_pad
    bytes_accessed = (4 * m_pad * kdim * 2 + 4 * kdim * out_pad * 2
                      + out_pad * 4 + 4 * m_pad * out_pad * 4)

    out = pl.pallas_call(
        _dec_kernel,
        grid=(4, m_pad // tm),
        in_specs=[
            pl.BlockSpec((None, tm, kdim), lambda p, i: (p, i, 0)),
            pl.BlockSpec((None, kdim, out_pad), lambda p, i: (p, 0, 0)),
            pl.BlockSpec((1, out_pad), lambda p, i: (0, 0)),
        ],
        out_specs=pl.BlockSpec((None, tm, out_pad), lambda p, i: (p, i, 0)),
        out_shape=jax.ShapeDtypeStruct((4, m_pad, out_pad), jnp.float32),
        compiler_params=pltpu.CompilerParams(
            dimension_semantics=("parallel", "parallel")),
        cost_estimate=pl.CostEstimate(flops=flops,
                                      transcendentals=4 * m_pad * out_pad,
                                      bytes_accessed=bytes_accessed),
    )(patches, w_eff, b_pad)

    # interleave phases: result[n, 2i+a, 2j+b, :] = out[2a+b, (n,i,j), :]
    out = out[:, :m, :cout].reshape(2, 2, n, hc, wc, cout)
    out = jnp.transpose(out, (2, 3, 0, 4, 1, 5)).reshape(n, 2 * hc, 2 * wc, cout)
    return out


# ----------------------------------------------------------------------------
# Full forward (pure, jitted) + PyTorch-like wrapper with .loss side channel
# ----------------------------------------------------------------------------
@functools.partial(jax.jit, static_argnames=("beta", "block_rows"))
def vqgan_forward(params, inputs_nchw, beta=0.25, block_rows=512):
    x = jnp.transpose(inputs_nchw, (0, 2, 3, 1)).astype(jnp.bfloat16)   # NHWC
    code, _index, cost = encoder_forward(params, x, beta=beta, block_rows=block_rows)
    recon_nhwc = decoder_forward(params, code, block_rows=block_rows)
    return jnp.transpose(recon_nhwc, (0, 3, 1, 2)), cost                # NCHW


class VQGANGenerator:
    """JAX/Pallas mirror of the PyTorch wrapper (loss side-channel kept for API
    parity; the jitted core returns the cost explicitly)."""

    def __init__(self, params, beta=0.25, block_rows=512):
        self.params = params
        self.beta = beta
        self.block_rows = block_rows
        self.store = None

    @property
    def loss(self):
        result = self.store
        self.store = None
        return result

    @loss.setter
    def loss(self, value):
        self.store = value

    def __call__(self, inputs_nchw):
        recon, cost = vqgan_forward(self.params, inputs_nchw,
                                    beta=self.beta, block_rows=self.block_rows)
        self.loss = cost
        return recon


# ----------------------------------------------------------------------------
def init_params(key, in_ch=4, hidden=32, codebook_size=64):
    k1, k2, k3, k4, k5 = jax.random.split(key, 5)
    return {
        # encoder conv: 3x3, stride 2, in_ch -> hidden  (im2col layout)
        "enc_w": 0.1 * jax.random.normal(k1, (3 * 3 * in_ch, hidden), jnp.float32),
        "enc_b": 0.01 * jax.random.normal(k2, (hidden,), jnp.float32),
        # codebook: [K, hidden]
        "codebook": jax.random.normal(k3, (codebook_size, hidden), jnp.float32),
        # decoder conv: 3x3, stride 1, hidden -> in_ch  (spatial-tap layout)
        "dec_w": 0.1 * jax.random.normal(k4, (3, 3, hidden, in_ch), jnp.float32),
        "dec_b": 0.01 * jax.random.normal(k5, (in_ch,), jnp.float32),
    }


if __name__ == "__main__":
    key = jax.random.PRNGKey(0)
    kx, kp = jax.random.split(key)

    x = jax.random.normal(kx, (2, 4, 16, 16), jnp.float32)      # NCHW input
    params = init_params(kp, in_ch=4, hidden=32, codebook_size=64)

    # small row tile so the toy shapes still exercise the multi-tile parallel grid
    gen = VQGANGenerator(params, block_rows=64)
    reconstruction = gen(x)
    loss = gen.loss

    jax.block_until_ready(reconstruction)
    jax.block_until_ready(loss)

    assert reconstruction.shape == (2, 4, 16, 16)
    assert loss.shape == ()
    assert bool(jnp.isfinite(loss))
    print("KERNEL_OK")
</pallas_src>

<mosaic_0001>
module attributes {stable_mosaic.version = 11 : i64} {
  func.func @_enc_vq_kernel(%arg0: i32, %arg1: memref<64x36xbf16, #tpu.memory_space<vmem>>, %arg2: memref<36x32xbf16, #tpu.memory_space<vmem>>, %arg3: memref<1x32xf32, #tpu.memory_space<vmem>>, %arg4: memref<128x32xbf16, #tpu.memory_space<vmem>>, %arg5: memref<1x128xf32, #tpu.memory_space<vmem>>, %arg6: memref<64x128xf32, #tpu.memory_space<vmem>>) attributes {dimension_semantics = [#tpu.dimension_semantics<parallel>], iteration_bounds = array<i64: 2>, scalar_prefetch = 0 : i64, scratch_operands = 0 : i64, tpu.core_type = #tpu.core_type<tc>, window_params = [{transform_indices = @transform_0, window_bounds = array<i64: 64, 36>}, {pipeline_mode = #tpu.pipeline_mode<synchronous>, transform_indices = @transform_1, window_bounds = array<i64: 36, 32>}, {pipeline_mode = #tpu.pipeline_mode<synchronous>, transform_indices = @transform_2, window_bounds = array<i64: 1, 32>}, {pipeline_mode = #tpu.pipeline_mode<synchronous>, transform_indices = @transform_3, window_bounds = array<i64: 128, 32>}, {pipeline_mode = #tpu.pipeline_mode<synchronous>, transform_indices = @transform_4, window_bounds = array<i64: 1, 128>}, {transform_indices = @transform_5, window_bounds = array<i64: 64, 128>}]} {
    %c0 = arith.constant 0 : index
    %c0_0 = arith.constant 0 : index
    %0 = vector.load %arg1[%c0, %c0_0] : memref<64x36xbf16, #tpu.memory_space<vmem>>, vector<64x36xbf16>
    %c0_1 = arith.constant 0 : index
    %c0_2 = arith.constant 0 : index
    %1 = vector.load %arg2[%c0_1, %c0_2] : memref<36x32xbf16, #tpu.memory_space<vmem>>, vector<36x32xbf16>
    %cst = arith.constant dense<0.000000e+00> : vector<64x32xf32>
    %2 = tpu.matmul %0, %1, %cst {dimension_numbers = #tpu.dot_dimension_numbers<[1], [0], [0], [1], [0, 0, 1, 1], [], []>} : vector<64x36xbf16>, vector<36x32xbf16>, vector<64x32xf32> -> vector<64x32xf32>
    %c0_3 = arith.constant 0 : index
    %c0_4 = arith.constant 0 : index
    %3 = vector.load %arg3[%c0_3, %c0_4] : memref<1x32xf32, #tpu.memory_space<vmem>>, vector<1x32xf32>
    %4 = vector.broadcast %3 : vector<1x32xf32> to vector<64x32xf32>
    %5 = arith.addf %2, %4 : vector<64x32xf32>
    %cst_5 = arith.constant 0.000000e+00 : f32
    %6 = vector.broadcast %cst_5 : f32 to vector<64x32xf32>
    %7 = arith.maximumf %5, %6 : vector<64x32xf32>
    %8 = arith.truncf %7 : vector<64x32xf32> to vector<64x32xbf16>
    %c0_6 = arith.constant 0 : index
    %c0_7 = arith.constant 0 : index
    %9 = vector.load %arg4[%c0_6, %c0_7] : memref<128x32xbf16, #tpu.memory_space<vmem>>, vector<128x32xbf16>
    %cst_8 = arith.constant dense<0.000000e+00> : vector<64x128xf32>
    %10 = tpu.matmul %8, %9, %cst_8 {dimension_numbers = #tpu.dot_dimension_numbers<[1], [1], [0], [0], [0, 0, 1, 0], [], []>} : vector<64x32xbf16>, vector<128x32xbf16>, vector<64x128xf32> -> vector<64x128xf32>
    %c0_9 = arith.constant 0 : index
    %c0_10 = arith.constant 0 : index
    %11 = vector.load %arg5[%c0_9, %c0_10] : memref<1x128xf32, #tpu.memory_space<vmem>>, vector<1x128xf32>
    %cst_11 = arith.constant 2.000000e+00 : f32
    %12 = vector.broadcast %cst_11 : f32 to vector<64x128xf32>
    %13 = arith.mulf %12, %10 : vector<64x128xf32>
    %14 = vector.broadcast %11 : vector<1x128xf32> to vector<64x128xf32>
    %15 = arith.subf %14, %13 : vector<64x128xf32>
    %16 = tpu.iota {dimensions = array<i32: 1>} : vector<64x128xi32>
    %cst_12 = arith.constant dense<0x7F800000> : vector<64xf32>
    %17 = vector.multi_reduction <minimumf>, %15, %cst_12 [1] : vector<64x128xf32> to vector<64xf32>
    %18 = vector.shape_cast %17 : vector<64xf32> to vector<64x1xf32>
    %19 = vector.broadcast %18 : vector<64x1xf32> to vector<64x128xf32>
    %20 = arith.cmpf oeq, %15, %19 : vector<64x128xf32>
    %c128_i32 = arith.constant 128 : i32
    %21 = vector.broadcast %c128_i32 : i32 to vector<64x128xi32>
    %22 = arith.select %20, %16, %21 : vector<64x128xi1>, vector<64x128xi32>
    %cst_13 = arith.constant dense<2147483647> : vector<64xi32>
    %23 = vector.multi_reduction <minsi>, %22, %cst_13 [1] : vector<64x128xi32> to vector<64xi32>
    %24 = vector.shape_cast %23 : vector<64xi32> to vector<64x1xi32>
    %25 = vector.broadcast %24 : vector<64x1xi32> to vector<64x128xi32>
    %26 = arith.cmpi eq, %16, %25 : vector<64x128xi32>
    %27 = arith.extui %26 : vector<64x128xi1> to vector<64x128xi32>
    %28 = arith.sitofp %27 : vector<64x128xi32> to vector<64x128xf32>
    %29 = arith.truncf %28 : vector<64x128xf32> to vector<64x128xbf16>
    %c0_14 = arith.constant 0 : index
    %c0_15 = arith.constant 0 : index
    %30 = vector.load %arg4[%c0_14, %c0_15] : memref<128x32xbf16, #tpu.memory_space<vmem>>, vector<128x32xbf16>
    %cst_16 = arith.constant dense<0.000000e+00> : vector<64x32xf32>
    %31 = tpu.matmul %29, %30, %cst_16 {dimension_numbers = #tpu.dot_dimension_numbers<[1], [0], [0], [1], [0, 0, 1, 1], [], []>} : vector<64x128xbf16>, vector<128x32xbf16>, vector<64x32xf32> -> vector<64x32xf32>
    %32 = arith.subf %7, %31 : vector<64x32xf32>
    %33 = arith.mulf %32, %32 : vector<64x32xf32>
    %cst_17 = arith.constant dense<0.000000e+00> : vector<64xf32>
    %34 = vector.multi_reduction <add>, %33, %cst_17 [1] : vector<64x32xf32> to vector<64xf32>
    %35 = vector.shape_cast %34 : vector<64xf32> to vector<64x1xf32>
    %c0_18 = arith.constant 0 : index
    %c0_19 = arith.constant 0 : index
    %36 = vector.load %arg6[%c0_18, %c0_19] : memref<64x128xf32, #tpu.memory_space<vmem>>, vector<64x32xf32>
    tpu.vector_store %arg6[%c0_18, %c0_19], %31 {strides = array<i32>} : memref<64x128xf32, #tpu.memory_space<vmem>>, vector<64x32xf32>,
    %37 = arith.sitofp %24 : vector<64x1xi32> to vector<64x1xf32>
    %c0_20 = arith.constant 0 : index
    %c32 = arith.constant 32 : index
    %38 = vector.load %arg6[%c0_20, %c32] : memref<64x128xf32, #tpu.memory_space<vmem>>, vector<64x1xf32>
    tpu.vector_store %arg6[%c0_20, %c32], %37 {strides = array<i32>} : memref<64x128xf32, #tpu.memory_space<vmem>>, vector<64x1xf32>,
    %c0_21 = arith.constant 0 : index
    %c33 = arith.constant 33 : index
    %39 = vector.load %arg6[%c0_21, %c33] : memref<64x128xf32, #tpu.memory_space<vmem>>, vector<64x1xf32>
    tpu.vector_store %arg6[%c0_21, %c33], %35 {strides = array<i32>} : memref<64x128xf32, #tpu.memory_space<vmem>>, vector<64x1xf32>,
    %cst_22 = arith.constant 0.000000e+00 : f32
    %40 = vector.broadcast %cst_22 : f32 to vector<64x94xf32>
    %c0_23 = arith.constant 0 : index
    %c34 = arith.constant 34 : index
    %41 = vector.load %arg6[%c0_23, %c34] : memref<64x128xf32, #tpu.memory_space<vmem>>, vector<64x94xf32>
    tpu.vector_store %arg6[%c0_23, %c34], %40 {strides = array<i32>} : memref<64x128xf32, #tpu.memory_space<vmem>>, vector<64x94xf32>,
    return
  }
  func.func @transform_0(%arg0: i32) -> (i32, i32) {
    %c0_i32 = arith.constant 0 : i32
    %c0_i32_0 = arith.constant 0 : i32
    return %arg0, %c0_i32 : i32, i32
  }
  func.func @transform_1(%arg0: i32) -> (i32, i32) {
    %c0_i32 = arith.constant 0 : i32
    %c0_i32_0 = arith.constant 0 : i32
    %c0_i32_1 = arith.constant 0 : i32
    return %c0_i32, %c0_i32_0 : i32, i32
  }
  func.func @transform_2(%arg0: i32) -> (i32, i32) {
    %c0_i32 = arith.constant 0 : i32
    %c0_i32_0 = arith.constant 0 : i32
    %c0_i32_1 = arith.constant 0 : i32
    return %c0_i32, %c0_i32_0 : i32, i32
  }
  func.func @transform_3(%arg0: i32) -> (i32, i32) {
    %c0_i32 = arith.constant 0 : i32
    %c0_i32_0 = arith.constant 0 : i32
    %c0_i32_1 = arith.constant 0 : i32
    return %c0_i32, %c0_i32_0 : i32, i32
  }
  func.func @transform_4(%arg0: i32) -> (i32, i32) {
    %c0_i32 = arith.constant 0 : i32
    %c0_i32_0 = arith.constant 0 : i32
    %c0_i32_1 = arith.constant 0 : i32
    return %c0_i32, %c0_i32_0 : i32, i32
  }
  func.func @transform_5(%arg0: i32) -> (i32, i32) {
    %c0_i32 = arith.constant 0 : i32
    %c0_i32_0 = arith.constant 0 : i32
    return %arg0, %c0_i32 : i32, i32
  }
}

module attributes {stable_mosaic.version = 11 : i64} {
  func.func @_dec_kernel(%arg0: i32, %arg1: i32, %arg2: memref<1x64x128xbf16, #tpu.memory_space<vmem>>, %arg3: memref<1x128x128xbf16, #tpu.memory_space<vmem>>, %arg4: memref<1x128xf32, #tpu.memory_space<vmem>>, %arg5: memref<1x64x128xf32, #tpu.memory_space<vmem>>) attributes {dimension_semantics = [#tpu.dimension_semantics<parallel>, #tpu.dimension_semantics<parallel>], iteration_bounds = array<i64: 4, 2>, scalar_prefetch = 0 : i64, scratch_operands = 0 : i64, tpu.core_type = #tpu.core_type<tc>, window_params = [{transform_indices = @transform_0, window_bounds = array<i64: 1, 64, 128>}, {transform_indices = @transform_1, window_bounds = array<i64: 1, 128, 128>}, {pipeline_mode = #tpu.pipeline_mode<synchronous>, transform_indices = @transform_2, window_bounds = array<i64: 1, 128>}, {transform_indices = @transform_3, window_bounds = array<i64: 1, 64, 128>}]} {
    %c0 = arith.constant 0 : index
    %c0_0 = arith.constant 0 : index
    %c0_1 = arith.constant 0 : index
    %0 = vector.load %arg2[%c0, %c0_0, %c0_1] : memref<1x64x128xbf16, #tpu.memory_space<vmem>>, vector<1x64x128xbf16>
    %1 = vector.shape_cast %0 : vector<1x64x128xbf16> to vector<64x128xbf16>
    %c0_2 = arith.constant 0 : index
    %c0_3 = arith.constant 0 : index
    %c0_4 = arith.constant 0 : index
    %2 = vector.load %arg3[%c0_2, %c0_3, %c0_4] : memref<1x128x128xbf16, #tpu.memory_space<vmem>>, vector<1x128x128xbf16>
    %3 = vector.shape_cast %2 : vector<1x128x128xbf16> to vector<128x128xbf16>
    %cst = arith.constant dense<0.000000e+00> : vector<64x128xf32>
    %4 = tpu.matmul %1, %3, %cst {dimension_numbers = #tpu.dot_dimension_numbers<[1], [0], [0], [1], [0, 0, 1, 1], [], []>} : vector<64x128xbf16>, vector<128x128xbf16>, vector<64x128xf32> -> vector<64x128xf32>
    %c0_5 = arith.constant 0 : index
    %c0_6 = arith.constant 0 : index
    %5 = vector.load %arg4[%c0_5, %c0_6] : memref<1x128xf32, #tpu.memory_space<vmem>>, vector<1x128xf32>
    %6 = vector.broadcast %5 : vector<1x128xf32> to vector<64x128xf32>
    %7 = arith.addf %4, %6 : vector<64x128xf32>
    %8 = math.tanh %7 : vector<64x128xf32>
    %c0_7 = arith.constant 0 : index
    %c0_8 = arith.constant 0 : index
    %c0_9 = arith.constant 0 : index
    %9 = vector.load %arg5[%c0_7, %c0_8, %c0_9] : memref<1x64x128xf32, #tpu.memory_space<vmem>>, vector<1x64x128xf32>
    %10 = vector.shape_cast %9 : vector<1x64x128xf32> to vector<64x128xf32>
    %11 = vector.shape_cast %8 : vector<64x128xf32> to vector<1x64x128xf32>
    tpu.vector_store %arg5[%c0_7, %c0_8, %c0_9], %11 {strides = array<i32>} : memref<1x64x128xf32, #tpu.memory_space<vmem>>, vector<1x64x128xf32>,
    return
  }
  func.func @transform_0(%arg0: i32, %arg1: i32) -> (i32, i32, i32) {
    %c0_i32 = arith.constant 0 : i32
    %c0_i32_0 = arith.constant 0 : i32
    return %arg0, %arg1, %c0_i32 : i32, i32, i32
  }
  func.func @transform_1(%arg0: i32, %arg1: i32) -> (i32, i32, i32) {
    %c0_i32 = arith.constant 0 : i32
    %c0_i32_0 = arith.constant 0 : i32
    %c0_i32_1 = arith.constant 0 : i32
    return %arg0, %c0_i32, %c0_i32_0 : i32, i32, i32
  }
  func.func @transform_2(%arg0: i32, %arg1: i32) -> (i32, i32) {
    %c0_i32 = arith.constant 0 : i32
    %c0_i32_0 = arith.constant 0 : i32
    %c0_i32_1 = arith.constant 0 : i32
    return %c0_i32, %c0_i32_0 : i32, i32
  }
  func.func @transform_3(%arg0: i32, %arg1: i32) -> (i32, i32, i32) {
    %c0_i32 = arith.constant 0 : i32
    %c0_i32_0 = arith.constant 0 : i32
    return %arg0, %arg1, %c0_i32 : i32, i32, i32
  }
}

</mosaic_0001>

<bundles_post_ra>
// kernel: vqgan_forward.3
= control target key start
LH: loop header
LB: loop body
LE: loop exit
PB: predicated region body
PF: predicated region fallthrough
CT: control target
= control target key end

     0   :  { %s726_s12 = smov 0   ;;  %s728_s13 = smov 0   ;;  %s803_s0 = inlined_call_operand.vmem [shape: bf16[4,128,128], index: 0, kind: input, shape index: {}]   ;;  %s804_s1 = inlined_call_operand.vmem [shape: bf16[4,128,128], index: 1, kind: input, shape index: {}]   ;;  %s805_s2 = inlined_call_operand.vmem [shape: f32[1,128], index: 2, kind: input, shape index: {}]   ;;  %s806_s3 = inlined_call_operand.vmem [shape: f32[4,128,128], index: 3, kind: output, shape index: {}]  }
   0x1   :  { %s730_s14 = smov 0   ;;  %s732_s15 = smov 0  }
   0x2   :  { %s734_s16 = smov 0  }
   0x3 LB: > { %s22_s17 = sadd.s32 1, %s696_s14  ;;  %s25_s18 = sadd.s32 1, %s700_s15  ;;  %s704_s16 = sphi %s734_s16, %s13_s16   ;;  %s700_s15 = sphi %s732_s15, %s810_s15   ;;  %s696_s14 = sphi %s730_s14, %s809_s14   ;;  %s692_s13 = sphi %s728_s13, %s808_s13   ;;  %s688_s12 = sphi %s726_s12, %s807_s12  }
   0x4   : > { %p23_p0 = scmp.ge.s32.totalorder %s22_s17, 2  ;;  %p521_p1 = scmp.ge.s32.totalorder %s704_s16, 1 }
   0x5   : > { %p168_p2 = scmp.lt.s32.totalorder %s704_s16, 9 }
   0x6   : > { %s812_s17 = smov (%p23_p0, %s22_s17), 0  ;;  %s814_s18 = smov (!%p23_p0, %s25_s18), %s700_s15 }
   0x7   : > { %p169_p3 = pnand %p521_p1, %p168_p2  ;;  %p27_p4 = scmp.ge.s32.totalorder %s814_s18, 4 }
   0x8   : > { %p206_p5 = scmp.lt.s32.totalorder (!%p169_p3), %s692_s13, 3  ;;  %s522_s19 = sshll.u32 (!%p169_p3), %s688_s12, 3 }
   0x9   : > { %s816_s18 = smov (%p27_p4, %s814_s18), 0  ;;  %172 = sbr.rel (%p169_p3) target bundleno = 267 (0x10b), region = 32 }
   0xa   : > { %p208_p6 = scmp.lt.s32.totalorder (!%p169_p3), %s522_s19, 15 }
   0xe   : > { %s818_s13 = smov (!%p206_p5, %s692_s13), 3  ;;  %s820_s19 = smov (!%p208_p6, %s522_s19), 15  ;;  %v530_v12 = vld [vmem:[%s805_s2] ss:$0 sm:$0xff] }
   0xf   : > { %s545_s20 = sshll.u32 %s818_s13, 6  ;;  %s523_s21 = sshll.u32 %s818_s13, 4 }
  0x10   : > { %s759_s24 = scalar_lea.vmem %s804_s1, %s545_s20  ;;  %s761_s25 = sadd.s32 %s523_s21, %s820_s19 }
  0x11   : > { %v638_v0 = vld [vmem:[%s759_s24 + $0x38] sm:$0xff]   ;;  %v639_v1 = vld [vmem:[%s759_s24 + $0x30] sm:$0xff]   ;;  %s524_s26 = sshll.u32 %s761_s25, 2  ;;  %v640_v2 = vld [vmem:[%s759_s24 + $0x28] sm:$0xff]   ;;  %s529_s5 = sshll.u32 %s761_s25, 3 }
  0x12   : > { %558 = vmatprep.subr.bf16.mxu0 %v638_v0  ;;  %582 = vmatprep.subr.bf16.mxu1 %v638_v0  ;;  %s770_s29 = scalar_lea.vmem %s803_s0, %s524_s26  ;;  %v641_v3 = vld [vmem:[%s759_s24 + $0x20] sm:$0xff]   ;;  %v642_v6 = vld [vmem:[%s759_s24 + $0x18] sm:$0xff]   ;;  %v643_v7 = vld [vmem:[%s759_s24 + $0x10] sm:$0xff]   ;;  %s228_s8 = scalar_lea.vmem %s806_s3, %s529_s5 }
  0x13   : > { %559 = vmatpush3.bf16.msra.mxu0 %v638_v0  ;;  %590 = vmatpush3.bf16.msra.mxu1 %v638_v0  ;;  %v646_v4 = vld [vmem:[%s770_s29] sm:$0xff]   ;;  %v647_v5 = vld [vmem:[%s770_s29 + $0x10] sm:$0xff]   ;;  %v644_v8 = vld [vmem:[%s759_s24 + $0x8] sm:$0xff]  }
  0x14   : > { %560 = vmatprep.subr.bf16.mxu0 %v639_v1  ;;  %583 = vmatprep.subr.bf16.mxu1 %v639_v1  ;;  %v645_v9 = vld [vmem:[%s759_s24] sm:$0xff]   ;;  %v648_v10 = vld [vmem:[%s770_s29 + $0x8] sm:$0xff]   ;;  %v649_v11 = vld [vmem:[%s770_s29 + $0x18] sm:$0xff]  }
  0x15   : > { %574 = vmatprep.mubr.bf16.mxu0 %v646_v4  ;;  %578 = vmatprep.mubr.bf16.mxu1 %v647_v5 }
  0x17   : > { %561 = vmatpush3.bf16.msra.mxu0 %v639_v1  ;;  %591 = vmatpush3.bf16.msra.mxu1 %v639_v1 }
  0x18   : > { %562 = vmatprep.subr.bf16.mxu0 %v640_v2  ;;  %584 = vmatprep.subr.bf16.mxu1 %v640_v2 }
  0x1b   : > { %563 = vmatpush3.bf16.msra.mxu0 %v640_v2  ;;  %592 = vmatpush3.bf16.msra.mxu1 %v640_v2 }
  0x1c   : > { %564 = vmatprep.subr.bf16.mxu0 %v641_v3  ;;  %585 = vmatprep.subr.bf16.mxu1 %v641_v3 }
  0x1f   : > { %565 = vmatpush3.bf16.msra.mxu0 %v641_v3  ;;  %593 = vmatpush3.bf16.msra.mxu1 %v641_v3 }
  0x20   : > { %566 = vmatprep.subr.bf16.mxu0 %v642_v6  ;;  %586 = vmatprep.subr.bf16.mxu1 %v642_v6 }
  0x23   : > { %567 = vmatpush3.bf16.msra.mxu0 %v642_v6  ;;  %594 = vmatpush3.bf16.msra.mxu1 %v642_v6 }
  0x24   : > { %568 = vmatprep.subr.bf16.mxu0 %v643_v7  ;;  %587 = vmatprep.subr.bf16.mxu1 %v643_v7 }
  0x27   : > { %569 = vmatpush3.bf16.msra.mxu0 %v643_v7  ;;  %595 = vmatpush3.bf16.msra.mxu1 %v643_v7 }
  0x28   : > { %570 = vmatprep.subr.bf16.mxu0 %v644_v8  ;;  %588 = vmatprep.subr.bf16.mxu1 %v644_v8 }
  0x2b   : > { %571 = vmatpush3.bf16.msra.mxu0 %v644_v8  ;;  %596 = vmatpush3.bf16.msra.mxu1 %v644_v8 }
  0x2c   : > { %572 = vmatprep.subr.bf16.mxu0 %v645_v9  ;;  %589 = vmatprep.subr.bf16.mxu1 %v645_v9 }
  0x2f   : > { %573 = vmatpush3.bf16.msra.mxu0 %v645_v9  ;;  %597 = vmatpush3.bf16.msra.mxu1 %v645_v9 }
  0x32   : > { %575 = vmatmul.mubr.bf16.vlgmr.msra.gmra.mxu0 %v648_v10  ;;  %579 = vmatmul.mubr.bf16.vlgmr.msra.gmra.mxu1 %v649_v11 }
  0xf2   : > { %v576_v13 = vpop.f32.mrf.mxu0  ;;  %v580_v14 = vpop.f32.mrf.mxu1 }
  0xf3   : > { %v377_v15 = vadd.f32 %v576_v13, %v530_v12  ;;  %v393_v16 = vadd.f32 %v580_v14, %v530_v12 }
  0xf4   : > { %v368_v17 = vpop.f32.mrf.mxu0  ;;  %v384_v18 = vpop.f32.mrf.mxu1 }
  0xf5   : > { %650 = vtanh.f32 %v377_v15  ;;  %v369_v19 = vadd.f32 %v530_v12, %v368_v17  ;;  %v385_v20 = vadd.f32 %v530_v12, %v384_v18 }
  0xf6   : > { %652 = vtanh.f32 %v393_v16  ;;  %v577_v21 = vpop.f32.mrf.mxu0  ;;  %v581_v22 = vpop.f32.mrf.mxu1 }
  0xf7   : > { %654 = vtanh.f32 %v369_v19  ;;  %v380_v23 = vadd.f32 %v577_v21, %v530_v12  ;;  %v396_v24 = vadd.f32 %v581_v22, %v530_v12 }
  0xf8   : > { %656 = vtanh.f32 %v385_v20  ;;  %v371_v25 = vpop.f32.mrf.mxu0  ;;  %v387_v26 = vpop.f32.mrf.mxu1 }
  0xf9   : > { %658 = vtanh.f32 %v380_v23  ;;  %v372_v27 = vadd.f32 %v530_v12, %v371_v25  ;;  %v388_v28 = vadd.f32 %v530_v12, %v387_v26 }
  0xfa   : > { %660 = vtanh.f32 %v396_v24 }
  0xfb   : > { %662 = vtanh.f32 %v372_v27 }
  0xfc   : > { %664 = vtanh.f32 %v388_v28 }
 0x102   : > { %v651_v29 = vpop.eup %650 }
 0x103   : > { %v653_v30 = vpop.eup %652  ;;  %409 = vst [vmem:[%s228_s8 + $0x10] sm:$0xff] %v651_v29 }
 0x104   : > { %v655_v31 = vpop.eup %654  ;;  %413 = vst [vmem:[%s228_s8 + $0x30] sm:$0xff] %v653_v30 }
 0x105   : > { %v657_v32 = vpop.eup %656  ;;  %407 = vst [vmem:[%s228_s8] sm:$0xff] %v655_v31 }
 0x106   : > { %v659_v33 = vpop.eup %658  ;;  %411 = vst [vmem:[%s228_s8 + $0x20] sm:$0xff] %v657_v32 }
 0x107   : > { %v661_v34 = vpop.eup %660  ;;  %410 = vst [vmem:[%s228_s8 + $0x18] sm:$0xff] %v659_v33 }
 0x108   : > { %v663_v35 = vpop.eup %662  ;;  %414 = vst [vmem:[%s228_s8 + $0x38] sm:$0xff] %v661_v34 }
 0x109   : > { %v665_v36 = vpop.eup %664  ;;  %408 = vst [vmem:[%s228_s8 + $0x8] sm:$0xff] %v663_v35 }
 0x10a   : > { %412 = vst [vmem:[%s228_s8 + $0x28] sm:$0xff] %v665_v36 }
 0x10b PF: > { %s13_s16 = sadd.s32 1, %s704_s16   ;;  %s807_s12 = smov %s696_s14 }
 0x10c   : > { %p10_p7 = scmp.ge.s32.totalorder %s13_s16, 10   ;;  %s808_s13 = smov %s700_s15 }
 0x10d   : > { %s809_s14 = smov %s812_s17  ;;  %s810_s15 = smov %s816_s18 }
 0x10e   :  { %12 = sbr.rel (!%p10_p7) target bundleno = 3 (0x3), region = 65 }

// kernel: vqgan_forward.2
= control target key start
LH: loop header
LB: loop body
LE: loop exit
PB: predicated region body
PF: predicated region fallthrough
CT: control target
= control target key end

     0   :  { %s1164_s18 = smov 0   ;;  %s1408_s0 = inlined_call_operand.vmem [shape: bf16[128,36], index: 0, kind: input, shape index: {}]   ;;  %s1409_s1 = inlined_call_operand.vmem [shape: bf16[36,32], index: 1, kind: input, shape index: {}]   ;;  %s1410_s2 = inlined_call_operand.vmem [shape: f32[1,32], index: 2, kind: input, shape index: {}]   ;;  %s1411_s3 = inlined_call_operand.vmem [shape: bf16[128,32], index: 3, kind: input, shape index: {}]   ;;  %s1412_s4 = inlined_call_operand.vmem [shape: f32[1,128], index: 4, kind: input, shape index: {}]   ;;  %s1413_s5 = inlined_call_operand.vmem [shape: f32[128,128], index: 5, kind: output, shape index: {}]  }
   0x1 LB: > { %s945_s19 = sadd.s32 4294967295, %s1130_s18   ;;  %p949_p0 = scmp.ge.s32.totalorder %s1130_s18, 1  ;;  %s1130_s18 = sphi %s1164_s18, %s15_s18  }
   0x2   : > { %p188_p1 = scmp.lt.s32.totalorder %s1130_s18, 3 }
   0x4   : > { %p189_p2 = pnand %p949_p0, %p188_p1 }
   0x5   : > { %s950_s24 = sshll.u32 (!%p189_p2), %s945_s19, 3 }
   0x6   : > { %192 = sbr.rel (%p189_p2) target bundleno = 1221 (0x4c5), region = 40  ;;  %p217_p3 = scmp.lt.s32.totalorder (!%p189_p2), %s950_s24, 15 }
   0xb   : > { %v1109_v0 = vld [vmem:[%s1409_s1 + $0x10] ss:$0 sps:$4 sm:$0x33]   ;;  %vm297_vm0 = vcmask 1041408   ;;  %v1110_v1 = vld [vmem:[%s1409_s1 + $0x8] sm:$0xff]   ;;  %v1111_v3 = vld [vmem:[%s1409_s1] sm:$0xff]  }
   0xc   : > { %1090 = vmatprep.subr.msk.bf16.mxu0 %vm297_vm0, %v1109_v0  ;;  %v299_v2 = vsel %vm297_vm0, %v1109_v0, 0  ;;  %v1116_v4 = vld [vmem:[%s1411_s3 + $0x38] sm:$0xff]   ;;  %vm434_vm1 = vcmask 261120   ;;  %s1415_s24 = smov (!%p217_p3, %s950_s24), 15  ;;  %v1117_v5 = vld [vmem:[%s1411_s3 + $0x30] sm:$0xff]   ;;  %vm284_vm2 = vcmask 293888  }
   0xd   : > { %1029 = vmatpush3.bf16.msra.mxu0 %v299_v2  ;;  %1091 = vmatprep.subr.msk.bf16.mxu1 %vm434_vm1, %v1116_v4  ;;  %v469_v6 = vsel %vm434_vm1, %v1116_v4, 0  ;;  %s951_s6 = sshll.u32 %s1415_s24, 2  ;;  %v466_v10 = vsel %vm434_vm1, %v1117_v5, 0  ;;  %v1118_v11 = vld [vmem:[%s1411_s3 + $0x28] sm:$0xff]   ;;  %v1119_v14 = vld [vmem:[%s1411_s3 + $0x20] sm:$0xff]   ;;  %v1120_v15 = vld [vmem:[%s1411_s3 + $0x18] sm:$0xff]  }
   0xe   : > { %1030 = vmatprep.subr.bf16.mxu0 %v1110_v1  ;;  %1043 = vmatpush3.bf16.xpose.msra.mxu1 %v469_v6  ;;  %s220_s9 = scalar_lea.vmem %s1408_s0, %s951_s6  ;;  %v463_v13 = vsel %vm434_vm1, %v1118_v11, 0  ;;  %v460_v16 = vsel %vm434_vm1, %v1119_v14, 0  ;;  %v1121_v17 = vld [vmem:[%s1411_s3 + $0x10] sm:$0xff]   ;;  %v1122_v18 = vld [vmem:[%s1411_s3 + $0x8] sm:$0xff]   ;;  %v457_v19 = vsel %vm434_vm1, %v1120_v15, 0  ;;  %v1123_v22 = vld [vmem:[%s1411_s3] sm:$0xff]  }
   0xf   : > { %1092 = vmatprep.subr.msk.bf16.mxu1 %vm434_vm1, %v1117_v5  ;;  %v1112_v7 = vld [vmem:[%s220_s9] sm:$0xff]   ;;  %v1113_v8 = vld [vmem:[%s220_s9 + $0x8] sm:$0xff]   ;;  %v1114_v9 = vld [vmem:[%s220_s9 + $0x10] sm:$0xff]   ;;  %v454_v20 = vsel %vm434_vm1, %v1121_v17, 0  ;;  %v451_v21 = vsel %vm434_vm1, %v1122_v18, 0  ;;  %v448_v23 = vsel %vm434_vm1, %v1123_v22, 0 }
  0x10   : > { %1034 = vmatprep.mubr.msk.bf16.mxu0 %vm284_vm2, %v1112_v7  ;;  %v1115_v12 = vld [vmem:[%s220_s9 + $0x18] sm:$0xff]   ;;  %v954_v26 = vld [vmem:[%s1410_s2] ss:$0 sm:$0xff]  ;;  %s953_s28 = sshll.u32 %s1415_s24, 3 }
  0x11   : > { %1031 = vmatpush3.bf16.msra.mxu0 %v1110_v1  ;;  %v978_v54 = vld [vmem:[%s1412_s4] ss:$0 sm:$0xff]  ;;  %s1312_s6 = scalar_lea.vmem %s1413_s5, %s953_s28 }
  0x12   : > { %1032 = vmatprep.subr.bf16.mxu0 %v1111_v3 }
  0x15   : > { %1033 = vmatpush3.bf16.msra.mxu0 %v1111_v3 }
  0x16   : > { %1066 = vmatprep.subr.bf16.mxu0 %v1116_v4  ;;  %1045 = vmatpush3.bf16.xpose.msra.mxu1 %v466_v10 }
  0x17   : > { %1093 = vmatprep.subr.msk.bf16.mxu1 %vm434_vm1, %v1118_v11 }
  0x18   : > { %1035 = vmatmul.mubr.msk.bf16.vlgmr.msra.gmra.mxu0 %vm284_vm2, %v1113_v8 }
  0x19   : > { %1038 = vmatprep.mubr.msk.bf16.mxu0 %vm284_vm2, %v1114_v9  ;;  %1067 = vmatpush3.bf16.msra.mxu0 %v1116_v4 }
  0x1a   : > { %1068 = vmatprep.subr.bf16.mxu0 %v1117_v5 }
  0x1d   : > { %1069 = vmatpush3.bf16.msra.mxu0 %v1117_v5 }
  0x1e   : > { %1070 = vmatprep.subr.bf16.mxu0 %v1118_v11  ;;  %1047 = vmatpush3.bf16.xpose.msra.mxu1 %v463_v13 }
  0x1f   : > { %1094 = vmatprep.subr.msk.bf16.mxu1 %vm434_vm1, %v1119_v14 }
  0x20   : > { %1039 = vmatmul.mubr.msk.bf16.gmra.mxu0 %vm284_vm2, %v1115_v12 }
  0x21   : > { %1071 = vmatpush3.bf16.msra.mxu0 %v1118_v11 }
  0x22   : > { %1072 = vmatprep.subr.bf16.mxu0 %v1119_v14 }
  0x25   : > { %1073 = vmatpush3.bf16.msra.mxu0 %v1119_v14  ;;  %v559_v14 = vlaneseq }
  0x26   : > { %1074 = vmatprep.subr.bf16.mxu0 %v1120_v15  ;;  %1049 = vmatpush3.bf16.xpose.msra.mxu1 %v460_v16 }
  0x27   : > { %1095 = vmatprep.subr.msk.bf16.mxu1 %vm434_vm1, %v1120_v15 }
  0x29   : > { %1075 = vmatpush3.bf16.msra.mxu0 %v1120_v15  ;;  %v1281_v15 = vand.u32 127, %v559_v14 }
  0x2a   : > { %1076 = vmatprep.subr.bf16.mxu0 %v1121_v17 }
  0x2d   : > { %1077 = vmatpush3.bf16.msra.mxu0 %v1121_v17 }
  0x2e   : > { %1078 = vmatprep.subr.bf16.mxu0 %v1122_v18  ;;  %1051 = vmatpush3.bf16.xpose.msra.mxu1 %v457_v19 }
  0x2f   : > { %1096 = vmatprep.subr.msk.bf16.mxu1 %vm434_vm1, %v1121_v17 }
  0x31   : > { %1079 = vmatpush3.bf16.msra.mxu0 %v1122_v18 }
  0x32   : > { %1080 = vmatprep.subr.bf16.mxu0 %v1123_v22 }
  0x35   : > { %1081 = vmatpush3.bf16.msra.mxu0 %v1123_v22 }
  0x36   : > { %1053 = vmatpush3.bf16.xpose.msra.mxu1 %v454_v20 }
  0x37   : > { %1097 = vmatprep.subr.msk.bf16.mxu1 %vm434_vm1, %v1122_v18 }
  0x3e   : > { %1055 = vmatpush3.bf16.xpose.msra.mxu1 %v451_v21 }
  0x3f   : > { %1098 = vmatprep.subr.msk.bf16.mxu1 %vm434_vm1, %v1123_v22 }
  0x46   : > { %1057 = vmatpush3.bf16.xpose.msra.mxu1 %v448_v23 }
  0xd8   : > { %v1036_v24 = vpop.f32.mrf.mxu0 }
  0xd9   : > { %v1238_v30 = vadd.f32 %v1036_v24, %v954_v26 }
  0xda   : > { %v335_v25 = vpop.f32.mrf.mxu0 }
  0xdb   : > { %v1234_v28 = vadd.f32 %v954_v26, %v335_v25  ;;  %v368_v37 = vmax.f32 %v1238_v30, 0.0 }
  0xdc   : > { %v1037_v27 = vpop.f32.mrf.mxu0 }
  0xdd   : > { %v1236_v29 = vadd.f32 %v1037_v27, %v954_v26  ;;  %v366_v35 = vmax.f32 %v1234_v28, 0.0 }
  0xde   : > { %v338_v31 = vpop.f32.mrf.mxu0 }
  0xdf   : > { %v1240_v32 = vadd.f32 %v954_v26, %v338_v31  ;;  %v369_v33 = vmax.f32 %v1236_v29, 0.0 }
  0xe0   : > { %v1040_v34 = vpop.f32.mrf.mxu0 }
  0xe1   : > { %v367_v36 = vmax.f32 %v1240_v32, 0.0  ;;  %v375_v40 = vpack.c.bf16 %v369_v33, %v368_v37  ;;  %v1259_v44 = vadd.f32 %v1040_v34, %v954_v26 }
  0xe2   : > { %v351_v38 = vpop.f32.mrf.mxu0 }
  0xe3   : > { %v374_v39 = vpack.c.bf16 %v367_v36, %v366_v35  ;;  %v1254_v42 = vadd.f32 %v954_v26, %v351_v38  ;;  %v372_v50 = vmax.f32 %v1259_v44, 0.0 }
  0xe4   : > { %v1041_v41 = vpop.f32.mrf.mxu0 }
  0xe5   : > { %v1256_v43 = vadd.f32 %v1041_v41, %v954_v26  ;;  %1058 = vmatprep.mubr.msk.bf16.mxu1 %vm434_vm1, %v374_v39  ;;  %v370_v48 = vmax.f32 %v1254_v42, 0.0 }
  0xe6   : > { %v354_v45 = vpop.f32.mrf.mxu0  ;;  %1059 = vmatmul.mubr.msk.bf16.vlgmr.msra.gmra.mxu1 %vm434_vm1, %v375_v40 }
  0xe7   : > { %v1262_v46 = vadd.f32 %v954_v26, %v354_v45  ;;  %v373_v47 = vmax.f32 %v1256_v43, 0.0 }
  0xe9   : > { %v371_v49 = vmax.f32 %v1262_v46, 0.0  ;;  %v377_v52 = vpack.c.bf16 %v373_v47, %v372_v50 }
  0xeb   : > { %v376_v51 = vpack.c.bf16 %v371_v49, %v370_v48 }
  0xed   : > { %1062 = vmatprep.mubr.msk.bf16.mxu1 %vm434_vm1, %v376_v51 }
  0xee   : > { %1063 = vmatmul.mubr.msk.bf16.gmra.mxu1 %vm434_vm1, %v377_v52 }
 0x1a6   : > { %v1060_v53 = vpop.f32.mrf.mxu1 }
 0x1a7   : > { %v539_v55 = vmul.f32 2.0, %v1060_v53 }
 0x1a8   : > { %v505_v56 = vpop.f32.mrf.mxu1 }
 0x1a9   : > { %v537_v57 = vmul.f32 2.0, %v505_v56  ;;  %v553_v58 = vsub.f32 %v978_v54, %v539_v55 }
 0x1aa   : > { %v1061_v59 = vpop.f32.mrf.mxu1 }
 0x1ab   : > { %v540_v60 = vmul.f32 2.0, %v1061_v59  ;;  %565 = vmin.xlane.f32.xlu1 %v553_v58  ;;  %v551_v61 = vsub.f32 %v978_v54, %v537_v57 }
 0x1ac   : > { %v508_v62 = vpop.f32.mrf.mxu1 }
 0x1ad   : > { %v538_v63 = vmul.f32 2.0, %v508_v62  ;;  %561 = vmin.xlane.f32.xlu0 %v551_v61  ;;  %v554_v0 = vsub.f32 %v978_v54, %v540_v60 }
 0x1ae   : > { %v1064_v1 = vpop.f32.mrf.mxu1 }
 0x1af   : > { %567 = vmin.xlane.f32.xlu1 %v554_v0  ;;  %v552_v2 = vsub.f32 %v978_v54, %v538_v63  ;;  %v543_v6 = vmul.f32 2.0, %v1064_v1 }
 0x1b0   : > { %v521_v3 = vpop.f32.mrf.mxu1 }
 0x1b1   : > { %v541_v4 = vmul.f32 2.0, %v521_v3  ;;  %563 = vmin.xlane.f32.xlu0 %v552_v2  ;;  %v557_v11 = vsub.f32 %v978_v54, %v543_v6 }
 0x1b2   : > { %v1065_v5 = vpop.f32.mrf.mxu1 }
 0x1b3   : > { %v555_v7 = vsub.f32 %v978_v54, %v541_v4  ;;  %v544_v10 = vmul.f32 2.0, %v1065_v5 }
 0x1b4   : > { %v524_v8 = vpop.f32.mrf.mxu1 }
 0x1b5   : > { %v542_v9 = vmul.f32 2.0, %v524_v8  ;;  %569 = vmin.xlane.f32.xlu0 %v555_v7  ;;  %v558_v13 = vsub.f32 %v978_v54, %v544_v10 }
 0x1b7   : > { %v556_v12 = vsub.f32 %v978_v54, %v542_v9 }
 0x1b9   : > { %573 = vmin.xlane.f32.xlu0 %v557_v11  ;;  %571 = vmin.xlane.f32.xlu1 %v556_v12 }
 0x1bd   : > { %575 = vmin.xlane.f32.xlu1 %v558_v13 }
 0x234   : > { %v566_v16 = vpop.xlane.xlu1 %565 }
 0x235   : > { %vm579_vm3 = vcmp.eq.f32.partialorder %v553_v58, %v566_v16 }
 0x236   : > { %v562_v17 = vpop.xlane.xlu0 %561  ;;  %v587_v18 = vsel %vm579_vm3, %v1281_v15, 128 }
 0x237   : > { %vm577_vm4 = vcmp.eq.f32.partialorder %v551_v61, %v562_v17  ;;  %v622_v24 = vshra.s32 %v587_v18, 16  ;;  %v621_v1 = vand.u32 65535, %v587_v18 }
 0x238   : > { %v585_v19 = vsel %vm577_vm4, %v1281_v15, 128  ;;  %v568_v20 = vpop.xlane.xlu1 %567 }
 0x239   : > { %vm580_vm5 = vcmp.eq.f32.partialorder %v554_v0, %v568_v20  ;;  %v594_v21 = vshra.s32 %v585_v19, 16  ;;  %v624_v34 = vcvt.s32.f32 %v622_v24  ;;  %v593_v0 = vand.u32 65535, %v585_v19 }
 0x23a   : > { %v564_v22 = vpop.xlane.xlu0 %563  ;;  %v588_v25 = vsel %vm580_vm5, %v1281_v15, 128  ;;  %v623_v10 = vcvt.s32.f32 %v621_v1 }
 0x23b   : > { %vm578_vm6 = vcmp.eq.f32.partialorder %v552_v2, %v564_v22  ;;  %v596_v23 = vcvt.s32.f32 %v594_v21  ;;  %v636_v39 = vshra.s32 %v588_v25, 16  ;;  %v595_v4 = vcvt.s32.f32 %v593_v0 }
 0x23c   : > { %v586_v26 = vsel %vm578_vm6, %v1281_v15, 128  ;;  %v635_v6 = vand.u32 65535, %v588_v25 }
 0x23d   : > { %597 = vmin.xlane.f32.xlu0 %v596_v23  ;;  %v608_v27 = vshra.s32 %v586_v26, 16  ;;  %v638_v53 = vcvt.s32.f32 %v636_v39  ;;  %v607_v2 = vand.u32 65535, %v586_v26 }
 0x23e   : > { %v570_v31 = vpop.xlane.xlu0 %569  ;;  %v637_v20 = vcvt.s32.f32 %v635_v6 }
 0x23f   : > { %vm581_vm7 = vcmp.eq.f32.partialorder %v555_v7, %v570_v31  ;;  %v610_v38 = vcvt.s32.f32 %v608_v27 }
 0x240   : > { %v589_v40 = vsel %vm581_vm7, %v1281_v15, 128 }
 0x241   : > { %625 = vmin.xlane.f32.xlu0 %v624_v34  ;;  %611 = vmin.xlane.f32.xlu1 %v610_v38  ;;  %v650_v41 = vshra.s32 %v589_v40, 16  ;;  %v649_v7 = vand.u32 65535, %v589_v40 }
 0x242   : > { %v574_v45 = vpop.xlane.xlu0 %573  ;;  %v572_v51 = vpop.xlane.xlu1 %571 }
 0x243   : > { %vm583_vm8 = vcmp.eq.f32.partialorder %v557_v11, %v574_v45  ;;  %vm582_vm9 = vcmp.eq.f32.partialorder %v556_v12, %v572_v51  ;;  %v652_v52 = vcvt.s32.f32 %v650_v41  ;;  %v609_v11 = vcvt.s32.f32 %v607_v2 }
 0x244   : > { %v591_v54 = vsel %vm583_vm8, %v1281_v15, 128  ;;  %v590_v55 = vsel %vm582_vm9, %v1281_v15, 128  ;;  %v651_v19 = vcvt.s32.f32 %v649_v7 }
 0x245   : > { %653 = vmin.xlane.f32.xlu0 %v652_v52  ;;  %639 = vmin.xlane.f32.xlu1 %v638_v53  ;;  %v678_v56 = vshra.s32 %v591_v54, 16  ;;  %v664_v57 = vshra.s32 %v590_v55, 16  ;;  %v677_v14 = vand.u32 65535, %v591_v54  ;;  %v663_v16 = vand.u32 65535, %v590_v55 }
 0x246   : > { %v576_v58 = vpop.xlane.xlu1 %575 }
 0x247   : > { %vm584_vm10 = vcmp.eq.f32.partialorder %v558_v13, %v576_v58  ;;  %v680_v59 = vcvt.s32.f32 %v678_v56  ;;  %v666_v60 = vcvt.s32.f32 %v664_v57  ;;  %v679_v26 = vcvt.s32.f32 %v677_v14 }
 0x248   : > { %v592_v61 = vsel %vm584_vm10, %v1281_v15, 128  ;;  %v665_v27 = vcvt.s32.f32 %v663_v16 }
 0x249   : > { %681 = vmin.xlane.f32.xlu0 %v680_v59  ;;  %667 = vmin.xlane.f32.xlu1 %v666_v60  ;;  %v692_v62 = vshra.s32 %v592_v61, 16 }
 0x24b   : > { %v694_v63 = vcvt.s32.f32 %v692_v62 }
 0x24d   : > { %695 = vmin.xlane.f32.xlu1 %v694_v63 }
 0x2c6   : > { %v598_v3 = vpop.xlane.xlu0 %597 }
 0x2c7   : > { %vm599_vm11 = vcmp.eq.f32.partialorder %v596_v23, %v598_v3  ;;  %v691_v23 = vand.u32 65535, %v592_v61  ;;  %v604_v41 = vcvt.f32.s32 %v598_v3 }
 0x2c8   : > { %v600_v5 = vsel %vm599_vm11, %v595_v4, inf }
 0x2c9   : > { %601 = vmin.xlane.f32.xlu0 %v600_v5  ;;  %v693_v39 = vcvt.s32.f32 %v691_v23 }
 0x2ca   : > { %v626_v8 = vpop.xlane.xlu0 %625  ;;  %v612_v9 = vpop.xlane.xlu1 %611 }
 0x2cb   : > { %vm627_vm12 = vcmp.eq.f32.partialorder %v624_v34, %v626_v8  ;;  %vm613_vm13 = vcmp.eq.f32.partialorder %v610_v38, %v612_v9  ;;  %v618_v51 = vcvt.f32.s32 %v612_v9  ;;  %v632_v54 = vcvt.f32.s32 %v626_v8 }
 0x2cc   : > { %v628_v12 = vsel %vm627_vm12, %v623_v10, inf  ;;  %v614_v13 = vsel %vm613_vm13, %v609_v11, inf }
 0x2cd   : > { %629 = vmin.xlane.f32.xlu0 %v628_v12  ;;  %615 = vmin.xlane.f32.xlu1 %v614_v13  ;;  %v619_v57 = vshll.u32 %v618_v51, 16  ;;  %v633_v1 = vshll.u32 %v632_v54, 16  ;;  %v1132_v12 = vmov 1.0|1.0  }
 0x2ce   : > { %v654_v17 = vpop.xlane.xlu0 %653  ;;  %v640_v18 = vpop.xlane.xlu1 %639 }
 0x2cf   : > { %vm655_vm14 = vcmp.eq.f32.partialorder %v652_v52, %v654_v17  ;;  %vm641_vm15 = vcmp.eq.f32.partialorder %v638_v53, %v640_v18  ;;  %v605_v53 = vshll.u32 %v604_v41, 16  ;;  %v646_v58 = vcvt.f32.s32 %v640_v18 }
 0x2d0   : > { %v656_v21 = vsel %vm655_vm14, %v651_v19, inf  ;;  %v642_v22 = vsel %vm641_vm15, %v637_v20, inf  ;;  %v660_v62 = vcvt.f32.s32 %v654_v17 }
 0x2d1   : > { %657 = vmin.xlane.f32.xlu0 %v656_v21  ;;  %643 = vmin.xlane.f32.xlu1 %v642_v22  ;;  %v647_v4 = vshll.u32 %v646_v58, 16 }
 0x2d2   : > { %v682_v24 = vpop.xlane.xlu0 %681  ;;  %v668_v25 = vpop.xlane.xlu1 %667  ;;  %v661_v8 = vshll.u32 %v660_v62, 16 }
 0x2d3   : > { %vm683_vm0 = vcmp.eq.f32.partialorder %v680_v59, %v682_v24  ;;  %vm669_vm2 = vcmp.eq.f32.partialorder %v666_v60, %v668_v25  ;;  %v674_v3 = vcvt.f32.s32 %v668_v25  ;;  %v688_v9 = vcvt.f32.s32 %v682_v24 }
 0x2d4   : > { %v684_v31 = vsel %vm683_vm0, %v679_v26, inf  ;;  %v670_v34 = vsel %vm669_vm2, %v665_v27, inf  ;;  %vm862_vm0 = vcmask 269568   ;;  %vm871_vm2 = vcmask 277768  }
 0x2d5   : > { %685 = vmin.xlane.f32.xlu0 %v684_v31  ;;  %671 = vmin.xlane.f32.xlu1 %v670_v34  ;;  %v675_v16 = vshll.u32 %v674_v3, 16  ;;  %v689_v20 = vshll.u32 %v688_v9, 16 }
 0x2d6   : > { %v696_v38 = vpop.xlane.xlu1 %695 }
 0x2d7   : > { %vm697_vm3 = vcmp.eq.f32.partialorder %v694_v63, %v696_v38  ;;  %v702_v10 = vcvt.f32.s32 %v696_v38 }
 0x2d8   : > { %v698_v40 = vsel %vm697_vm3, %v693_v39, inf  ;;  %vm880_vm3 = vcmask 1047824  }
 0x2d9   : > { %699 = vmin.xlane.f32.xlu1 %v698_v40  ;;  %v703_v22 = vshll.u32 %v702_v10, 16 }
 0x352   : > { %v602_v45 = vpop.xlane.xlu0 %601 }
 0x353   : > { %v603_v52 = vcvt.f32.s32 %v602_v45 }
 0x355   : > { %v606_v60 = vadd.s32 %v605_v53, %v603_v52 }
 0x356   : > { %v630_v55 = vpop.xlane.xlu0 %629  ;;  %v616_v56 = vpop.xlane.xlu1 %615 }
 0x357   : > { %v617_v59 = vcvt.f32.s32 %v616_v56  ;;  %v631_v61 = vcvt.f32.s32 %v630_v55  ;;  %vm705_vm4 = vcmp.eq.s32.totalorder %v1281_v15, %v606_v60 }
 0x359   : > { %v1291_v0 = vadd.s32 %v619_v57, %v617_v59  ;;  %v634_v6 = vadd.s32 %v633_v1, %v631_v61 }
 0x35a   : > { %v658_v63 = vpop.xlane.xlu0 %657  ;;  %v644_v2 = vpop.xlane.xlu1 %643 }
 0x35b   : > { %v659_v5 = vcvt.f32.s32 %v658_v63  ;;  %v645_v7 = vcvt.f32.s32 %v644_v2  ;;  %vm706_vm5 = vcmp.eq.s32.totalorder %v1281_v15, %v1291_v0  ;;  %vm707_vm7 = vcmp.eq.s32.totalorder %v1281_v15, %v634_v6 }
 0x35c   : > { %vm987_vm6 = vmpackc.low %vm706_vm5, %vm705_vm4  ;;  %v856_v27 = vcvt.s32.f32 %v634_v6  ;;  %v855_v28 = vcvt.s32.f32 %v1291_v0 }
 0x35d   : > { %v648_v11 = vadd.s32 %v647_v4, %v645_v7  ;;  %1082 = vmatprep.mubr.msk.bf16.mxu0 %vm987_vm6, %v1132_v12  ;;  %v1296_v17 = vadd.s32 %v661_v8, %v659_v5 }
 0x35e   : > { %v686_v13 = vpop.xlane.xlu0 %685  ;;  %v672_v14 = vpop.xlane.xlu1 %671 }
 0x35f   : > { %v687_v18 = vcvt.f32.s32 %v686_v13  ;;  %v673_v19 = vcvt.f32.s32 %v672_v14  ;;  %vm708_vm8 = vcmp.eq.s32.totalorder %v1281_v15, %v648_v11  ;;  %vm709_vm10 = vcmp.eq.s32.totalorder %v1281_v15, %v1296_v17 }
 0x360   : > { %vm989_vm9 = vmpackc.low %vm708_vm8, %vm707_vm7  ;;  %v857_v41 = vcvt.s32.f32 %v648_v11  ;;  %v858_v32 = vcvt.s32.f32 %v1296_v17 }
 0x361   : > { %v1300_v21 = vadd.s32 %v675_v16, %v673_v19  ;;  %1083 = vmatmul.mubr.msk.bf16.vlgmr.msra.gmra.mxu0 %vm989_vm9, %v1132_v12  ;;  %v690_v24 = vadd.s32 %v689_v20, %v687_v18 }
 0x362   : > { %v700_v23 = vpop.xlane.xlu1 %699 }
 0x363   : > { %v701_v25 = vcvt.f32.s32 %v700_v23  ;;  %vm710_vm11 = vcmp.eq.s32.totalorder %v1281_v15, %v1300_v21  ;;  %vm711_vm13 = vcmp.eq.s32.totalorder %v1281_v15, %v690_v24  ;;  %v860_v29 = vcvt.s32.f32 %v690_v24 }
 0x364   : > { %vm991_vm12 = vmpackc.low %vm710_vm11, %vm709_vm10  ;;  %v859_v0 = vcvt.s32.f32 %v1300_v21 }
 0x365   : > { %v704_v26 = vadd.s32 %v703_v22, %v701_v25  ;;  %1086 = vmatprep.mubr.msk.bf16.mxu0 %vm991_vm12, %v1132_v12 }
 0x367   : > { %vm712_vm14 = vcmp.eq.s32.totalorder %v1281_v15, %v704_v26  ;;  %v854_v15 = vcvt.s32.f32 %v606_v60  ;;  %v861_v59 = vcvt.s32.f32 %v704_v26 }
 0x368   : > { %vm993_vm15 = vmpackc.low %vm712_vm14, %vm711_vm13 }
 0x369   : > { %1087 = vmatmul.mubr.msk.bf16.gmra.mxu0 %vm993_vm15, %v1132_v12 }
 0x421   : > { %v1084_v31 = vpop.f32.mrf.mxu0 }
 0x422   : > { %v808_v34 = vsub.f32 %v368_v37, %v1084_v31  ;;  %848 = vst.msk [vmem:[%s1312_s6 + $0x10] sm:$0xff] %vm434_vm1, %v1084_v31 }
 0x423   : > { %865 = vst.msk [vmem:[%s1312_s6 + $0x10] sm:$0xff] %vm862_vm0, %v856_v27  ;;  %v775_v38 = vpop.f32.mrf.mxu0 }
 0x424   : > { %v816_v39 = vmul.f32 %v808_v34, %v808_v34  ;;  %v806_v40 = vsub.f32 %v366_v35, %v775_v38  ;;  %846 = vst.msk [vmem:[%s1312_s6] sm:$0xff] %vm434_vm1, %v775_v38 }
 0x425   : > { %863 = vst.msk [vmem:[%s1312_s6] sm:$0xff] %vm862_vm0, %v854_v15  ;;  %v1085_v30 = vpop.f32.mrf.mxu0 }
 0x426   : > { %v814_v37 = vmul.f32 %v806_v40, %v806_v40  ;;  %v809_v45 = vsub.f32 %v369_v33, %v1085_v30  ;;  %849 = vst.msk [vmem:[%s1312_s6 + $0x18] sm:$0xff] %vm434_vm1, %v1085_v30  ;;  %v828_v51 = vsel %vm434_vm1, %v816_v39, 0.0 }
 0x427   : > { %866 = vst.msk [vmem:[%s1312_s6 + $0x18] sm:$0xff] %vm862_vm0, %v857_v41  ;;  %829 = vadd.xlane.f32.xlu0 %v828_v51  ;;  %v778_v35 = vpop.f32.mrf.mxu0 }
 0x428   : > { %v817_v52 = vmul.f32 %v809_v45, %v809_v45  ;;  %v807_v53 = vsub.f32 %v367_v36, %v778_v35  ;;  %847 = vst.msk [vmem:[%s1312_s6 + $0x8] sm:$0xff] %vm434_vm1, %v778_v35  ;;  %v822_v55 = vsel %vm434_vm1, %v814_v37, 0.0 }
 0x429   : > { %864 = vst.msk [vmem:[%s1312_s6 + $0x8] sm:$0xff] %vm862_vm0, %v855_v28  ;;  %v1088_v33 = vpop.f32.mrf.mxu0 }
 0x42a   : > { %v815_v54 = vmul.f32 %v807_v53, %v807_v53  ;;  %852 = vst.msk [vmem:[%s1312_s6 + $0x30] sm:$0xff] %vm434_vm1, %v1088_v33  ;;  %v831_v56 = vsel %vm434_vm1, %v817_v52, 0.0  ;;  %v812_v57 = vsub.f32 %v372_v50, %v1088_v33 }
 0x42b   : > { %869 = vst.msk [vmem:[%s1312_s6 + $0x30] sm:$0xff] %vm862_vm0, %v860_v29  ;;  %823 = vadd.xlane.f32.xlu0 %v822_v55  ;;  %832 = vadd.xlane.f32.xlu1 %v831_v56  ;;  %v791_v36 = vpop.f32.mrf.mxu0 }
 0x42c   : > { %v810_v58 = vsub.f32 %v370_v48, %v791_v36  ;;  %850 = vst.msk [vmem:[%s1312_s6 + $0x20] sm:$0xff] %vm434_vm1, %v791_v36  ;;  %v825_v62 = vsel %vm434_vm1, %v815_v54, 0.0  ;;  %v820_v44 = vmul.f32 %v812_v57, %v812_v57 }
 0x42d   : > { %867 = vst.msk [vmem:[%s1312_s6 + $0x20] sm:$0xff] %vm862_vm0, %v858_v32  ;;  %v1089_v60 = vpop.f32.mrf.mxu0 }
 0x42e   : > { %v818_v61 = vmul.f32 %v810_v58, %v810_v58  ;;  %853 = vst.msk [vmem:[%s1312_s6 + $0x38] sm:$0xff] %vm434_vm1, %v1089_v60  ;;  %v813_v48 = vsub.f32 %v373_v47, %v1089_v60  ;;  %v840_v4 = vsel %vm434_vm1, %v820_v44, 0.0 }
 0x42f   : > { %870 = vst.msk [vmem:[%s1312_s6 + $0x38] sm:$0xff] %vm862_vm0, %v861_v59  ;;  %826 = vadd.xlane.f32.xlu1 %v825_v62  ;;  %v794_v42 = vpop.f32.mrf.mxu0 }
 0x430   : > { %v811_v50 = vsub.f32 %v371_v49, %v794_v42  ;;  %851 = vst.msk [vmem:[%s1312_s6 + $0x28] sm:$0xff] %vm434_vm1, %v794_v42  ;;  %v834_v1 = vsel %vm434_vm1, %v818_v61, 0.0  ;;  %v821_v2 = vmul.f32 %v813_v48, %v813_v48  ;;  %v1133_v49 = vmov 0.0  }
 0x431   : > { %868 = vst.msk [vmem:[%s1312_s6 + $0x28] sm:$0xff] %vm862_vm0, %v859_v0  ;;  %835 = vadd.xlane.f32.xlu0 %v834_v1 }
 0x432   : > { %v819_v63 = vmul.f32 %v811_v50, %v811_v50  ;;  %v843_v46 = vsel %vm434_vm1, %v821_v2, 0.0 }
 0x434   : > { %v837_v43 = vsel %vm434_vm1, %v819_v63, 0.0 }
 0x435   : > { %841 = vadd.xlane.f32.xlu0 %v840_v4  ;;  %838 = vadd.xlane.f32.xlu1 %v837_v43 }
 0x439   : > { %844 = vadd.xlane.f32.xlu1 %v843_v46 }
 0x4b0   : > { %v830_v47 = vpop.xlane.xlu0 %829 }
 0x4b1   : > { %874 = vst.msk [vmem:[%s1312_s6 + $0x10] sm:$0xff] %vm871_vm2, %v830_v47 }
 0x4b2   : > { %883 = vst.msk [vmem:[%s1312_s6 + $0x10] sm:$0xff] %vm880_vm3, %v1133_v49 }
 0x4b4   : > { %v824_v3 = vpop.xlane.xlu0 %823  ;;  %v833_v5 = vpop.xlane.xlu1 %832 }
 0x4b5   : > { %872 = vst.msk [vmem:[%s1312_s6] sm:$0xff] %vm871_vm2, %v824_v3  ;;  %875 = vst.msk [vmem:[%s1312_s6 + $0x18] sm:$0xff] %vm871_vm2, %v833_v5 }
 0x4b6   : > { %881 = vst.msk [vmem:[%s1312_s6] sm:$0xff] %vm880_vm3, %v1133_v49  ;;  %884 = vst.msk [vmem:[%s1312_s6 + $0x18] sm:$0xff] %vm880_vm3, %v1133_v49 }
 0x4b8   : > { %v827_v6 = vpop.xlane.xlu1 %826 }
 0x4b9   : > { %873 = vst.msk [vmem:[%s1312_s6 + $0x8] sm:$0xff] %vm871_vm2, %v827_v6 }
 0x4ba   : > { %882 = vst.msk [vmem:[%s1312_s6 + $0x8] sm:$0xff] %vm880_vm3, %v1133_v49  ;;  %v836_v7 = vpop.xlane.xlu0 %835 }
 0x4bb   : > { %876 = vst.msk [vmem:[%s1312_s6 + $0x20] sm:$0xff] %vm871_vm2, %v836_v7 }
 0x4bc   : > { %885 = vst.msk [vmem:[%s1312_s6 + $0x20] sm:$0xff] %vm880_vm3, %v1133_v49 }
 0x4be   : > { %v842_v8 = vpop.xlane.xlu0 %841  ;;  %v839_v9 = vpop.xlane.xlu1 %838 }
 0x4bf   : > { %878 = vst.msk [vmem:[%s1312_s6 + $0x30] sm:$0xff] %vm871_vm2, %v842_v8  ;;  %877 = vst.msk [vmem:[%s1312_s6 + $0x28] sm:$0xff] %vm871_vm2, %v839_v9 }
 0x4c0   : > { %887 = vst.msk [vmem:[%s1312_s6 + $0x30] sm:$0xff] %vm880_vm3, %v1133_v49  ;;  %886 = vst.msk [vmem:[%s1312_s6 + $0x28] sm:$0xff] %vm880_vm3, %v1133_v49 }
 0x4c2   : > { %v845_v10 = vpop.xlane.xlu1 %844 }
 0x4c3   : > { %879 = vst.msk [vmem:[%s1312_s6 + $0x38] sm:$0xff] %vm871_vm2, %v845_v10 }
 0x4c4   : > { %888 = vst.msk [vmem:[%s1312_s6 + $0x38] sm:$0xff] %vm880_vm3, %v1133_v49 }
 0x4c5 PF: > { %s15_s18 = sadd.s32 1, %s1130_s18  }
 0x4c6   : > { %p12_p4 = scmp.ge.s32.totalorder %s15_s18, 4  }
 0x4c8   :  { %14 = sbr.rel (!%p12_p4) target bundleno = 1 (0x1), region = 70 }

</bundles_post_ra>
